<compile_context>
chip_gen: v5e
topology: v5e:2x2
jax: 0.10.0
libtpu: 0.0.40
codegen_flags: <defaults>
</compile_context>

<pallas_src>
import jax
import jax.numpy as jnp
from jax.experimental import pallas as pl
from jax.experimental.pallas import tpu as pltpu


def _linear_kernel(x_ref, w_ref, b_ref, o_ref):
    # x_ref: (tile_m, Dp) VMEM tile, w_ref: (Dp, pack) VMEM (block-diagonal),
    # b_ref: (1,) SMEM scalar bias, o_ref: (tile_m, pack) VMEM output tile.
    acc = jnp.dot(x_ref[...], w_ref[...], preferred_element_type=jnp.float32)
    o_ref[...] = (acc + b_ref[0]).astype(o_ref.dtype)


def _choose_pack(d: int) -> int:
    # Pack consecutive logical rows until the packed width reaches 256
    # (full MXU contraction depth, multiple of the 128-lane vreg width),
    # whenever D divides 256 evenly.  Otherwise fall back to no packing.
    if d < 256 and 256 % d == 0:
        return 256 // d
    return 1


def _round_up(x: int, m: int) -> int:
    return ((x + m - 1) // m) * m


def linear_regression_forward(x, w, b, *, max_tile_rows=512,
                              tile_bytes_target=2 * 1024 * 1024):
    """Pallas TPU forward for `x @ w + b`.

    x: (N, D), w: (D, 1) or (D,), b: (1,) or scalar.  Returns (N, 1).
    """
    N, D = x.shape
    dtype = x.dtype
    w1 = jnp.asarray(w, dtype).reshape(D, 1)
    b1 = jnp.asarray(b, jnp.float32).reshape(1)

    pack = _choose_pack(D)
    Dp = D * pack                         # packed feature width
    M = -(-N // pack)                     # packed rows needed

    itemsize = jnp.dtype(dtype).itemsize
    rows_by_vmem = max(8, (tile_bytes_target // (Dp * itemsize)) // 8 * 8)
    tile_m = min(max_tile_rows, rows_by_vmem, _round_up(M, 8))
    num_tiles = -(-M // tile_m)
    M_pad = num_tiles * tile_m
    N_pad = M_pad * pack

    # Zero-pad the batch, then view `pack` logical rows as one physical row.
    x_pad = jnp.pad(x, ((0, N_pad - N), (0, 0)))
    x_packed = x_pad.reshape(M_pad, Dp)                   # free (row-major)
    # Block-diagonal weight: column j holds w in rows [j*D, (j+1)*D).
    w_packed = jnp.kron(jnp.eye(pack, dtype=dtype), w1)   # (Dp, pack)

    out = pl.pallas_call(
        _linear_kernel,
        out_shape=jax.ShapeDtypeStruct((M_pad, pack), dtype),
        grid_spec=pltpu.PrefetchScalarGridSpec(
            num_scalar_prefetch=0,
            grid=(num_tiles,),
            in_specs=[
                pl.BlockSpec((tile_m, Dp), lambda i: (i, 0)),          # x tile
                pl.BlockSpec((Dp, pack), lambda i: (0, 0)),            # weight
                pl.BlockSpec(memory_space=pltpu.MemorySpace.SMEM),     # bias
            ],
            out_specs=pl.BlockSpec((tile_m, pack), lambda i: (i, 0)),
        ),
        compiler_params=pltpu.CompilerParams(
            dimension_semantics=("parallel",),
            vmem_limit_bytes=32 * 1024 * 1024,
        ),
        cost_estimate=pl.CostEstimate(
            flops=2 * M_pad * Dp * pack,
            transcendentals=0,
            bytes_accessed=itemsize * (M_pad * Dp + Dp * pack + M_pad * pack),
        ),
    )(x_packed, w_packed, b1)

    # Flat order of the (M_pad, pack) result is exactly the padded row order.
    return out.reshape(N_pad, 1)[:N]


if __name__ == "__main__":
    key = jax.random.PRNGKey(0)
    k_x, k_w, k_b = jax.random.split(key, 3)

    # Small shapes consistent with the module: batch N=8, feature dim D=32.
    N, D = 8, 32
    x = jax.random.normal(k_x, (N, D), dtype=jnp.float32)
    w = jax.random.normal(k_w, (D, 1), dtype=jnp.float32)   # torch.randn(ndims, 1)
    b = jax.random.normal(k_b, (1,), dtype=jnp.float32)     # torch.randn(1)

    y = linear_regression_forward(x, w, b)
    jax.block_until_ready(y)

    y_ref = jnp.dot(x, w, precision=jax.lax.Precision.HIGHEST) + b
    assert y.shape == (N, 1)
    assert jnp.allclose(y, y_ref, atol=1e-3, rtol=1e-3)

    # Exercise the multi-tile + padding path with a larger batch.
    N2 = 10_000
    x2 = jax.random.normal(jax.random.PRNGKey(1), (N2, D), dtype=jnp.float32)
    y2 = linear_regression_forward(x2, w, b)
    jax.block_until_ready(y2)
    y2_ref = jnp.dot(x2, w, precision=jax.lax.Precision.HIGHEST) + b
    assert y2.shape == (N2, 1)
    assert jnp.allclose(y2, y2_ref, atol=1e-3, rtol=1e-3)

    print("KERNEL_OK")
</pallas_src>

<mosaic_0001>
module attributes {stable_mosaic.version = 11 : i64} {
  func.func @_linear_kernel(%arg0: i32, %arg1: memref<8x256xf32, #tpu.memory_space<vmem>>, %arg2: memref<256x8xf32, #tpu.memory_space<vmem>>, %arg3: memref<1xf32, #tpu.memory_space<smem>>, %arg4: memref<8x8xf32, #tpu.memory_space<vmem>>) attributes {dimension_semantics = [#tpu.dimension_semantics<parallel>], iteration_bounds = array<i64: 1>, scalar_prefetch = 0 : i64, scratch_operands = 0 : i64, tpu.core_type = #tpu.core_type<tc>, window_params = [{transform_indices = @transform_0, window_bounds = array<i64: 8, 256>}, {pipeline_mode = #tpu.pipeline_mode<synchronous>, transform_indices = @transform_1, window_bounds = array<i64: 256, 8>}, {transform_indices = @transform_2, window_bounds = array<i64: 1>}, {transform_indices = @transform_3, window_bounds = array<i64: 8, 8>}]} {
    %c0 = arith.constant 0 : index
    %c0_0 = arith.constant 0 : index
    %0 = vector.load %arg1[%c0, %c0_0] : memref<8x256xf32, #tpu.memory_space<vmem>>, vector<8x256xf32>
    %c0_1 = arith.constant 0 : index
    %c0_2 = arith.constant 0 : index
    %1 = vector.load %arg2[%c0_1, %c0_2] : memref<256x8xf32, #tpu.memory_space<vmem>>, vector<256x8xf32>
    %cst = arith.constant dense<0.000000e+00> : vector<8x8xf32>
    %2 = tpu.matmul %0, %1, %cst {dimension_numbers = #tpu.dot_dimension_numbers<[1], [0], [0], [1], [0, 0, 1, 1], [], []>} : vector<8x256xf32>, vector<256x8xf32>, vector<8x8xf32> -> vector<8x8xf32>
    %c0_3 = arith.constant 0 : index
    %3 = memref.load %arg3[%c0_3] : memref<1xf32, #tpu.memory_space<smem>>
    %4 = vector.broadcast %3 : f32 to vector<8x8xf32>
    %5 = arith.addf %2, %4 : vector<8x8xf32>
    %c0_4 = arith.constant 0 : index
    %c0_5 = arith.constant 0 : index
    %6 = vector.load %arg4[%c0_4, %c0_5] : memref<8x8xf32, #tpu.memory_space<vmem>>, vector<8x8xf32>
    tpu.vector_store %arg4[%c0_4, %c0_5], %5 {strides = array<i32>} : memref<8x8xf32, #tpu.memory_space<vmem>>, vector<8x8xf32>,
    return
  }
  func.func @transform_0(%arg0: i32) -> (i32, i32) {
    %c0_i32 = arith.constant 0 : i32
    %c0_i32_0 = arith.constant 0 : i32
    return %arg0, %c0_i32 : i32, i32
  }
  func.func @transform_1(%arg0: i32) -> (i32, i32) {
    %c0_i32 = arith.constant 0 : i32
    %c0_i32_0 = arith.constant 0 : i32
    %c0_i32_1 = arith.constant 0 : i32
    return %c0_i32, %c0_i32_0 : i32, i32
  }
  func.func @transform_2(%arg0: i32) -> i32 {
    %c0_i32 = arith.constant 0 : i32
    %c0_i32_0 = arith.constant 0 : i32
    return %c0_i32 : i32
  }
  func.func @transform_3(%arg0: i32) -> (i32, i32) {
    %c0_i32 = arith.constant 0 : i32
    %c0_i32_0 = arith.constant 0 : i32
    return %arg0, %c0_i32 : i32, i32
  }
}

</mosaic_0001>

<bundles_post_ra>
// kernel: tpu_custom_call.1
= control target key start
LH: loop header
LB: loop body
LE: loop exit
PB: predicated region body
PF: predicated region fallthrough
CT: control target
= control target key end

     0   :  { %s266_s0 = inlined_call_operand.vmem [shape: f32[8,256], index: 0, kind: input, shape index: {}]   ;;  %s267_s1 = inlined_call_operand.vmem [shape: f32[256,8], index: 1, kind: input, shape index: {}]   ;;  %s268_s2 = inlined_call_operand.<no memory space> [shape: f32[1], index: 2, kind: input, shape index: {}]   ;;  %s269_s3 = inlined_call_operand.hbm [shape: f32[8,8], index: 3, kind: output, shape index: {}]  }
   0x1   :  { %v33_v0 = vld [vmem:[%s267_s1 + $0x78] sm:$0xff]  ;;  %v32_v1 = vld [vmem:[%s267_s1 + $0x70] sm:$0xff]  ;;  %v31_v4 = vld [vmem:[%s267_s1 + $0x68] sm:$0xff] }
   0x2   :  { %v49_v2 = vld [vmem:[%s267_s1 + $0xf8] sm:$0xff]  ;;  %52 = vmatpush.msra.mxu0 %v33_v0  ;;  %v48_v3 = vld [vmem:[%s267_s1 + $0xf0] sm:$0xff]  ;;  %v47_v5 = vld [vmem:[%s267_s1 + $0xe8] sm:$0xff] }
   0x3   :  { %72 = vmatpush.msra.mxu1 %v49_v2  ;;  %v30_v6 = vld [vmem:[%s267_s1 + $0x60] sm:$0xff]  ;;  %v29_v8 = vld [vmem:[%s267_s1 + $0x58] sm:$0xff]  ;;  %v28_v10 = vld [vmem:[%s267_s1 + $0x50] sm:$0xff] }
   0x4   :  { %53 = vmatpush.msra.mxu0 %v32_v1  ;;  %v46_v7 = vld [vmem:[%s267_s1 + $0xe0] sm:$0xff]  ;;  %v45_v9 = vld [vmem:[%s267_s1 + $0xd8] sm:$0xff]  ;;  %v44_v11 = vld [vmem:[%s267_s1 + $0xd0] sm:$0xff] }
   0x5   :  { %73 = vmatpush.msra.mxu1 %v48_v3  ;;  %v27_v12 = vld [vmem:[%s267_s1 + $0x48] sm:$0xff] }
   0x6   :  { %54 = vmatpush.msra.mxu0 %v31_v4  ;;  %v43_v13 = vld [vmem:[%s267_s1 + $0xc8] sm:$0xff] }
   0x7   :  { %74 = vmatpush.msra.mxu1 %v47_v5 }
   0x8   :  { %55 = vmatpush.msra.mxu0 %v30_v6 }
   0x9   :  { %75 = vmatpush.msra.mxu1 %v46_v7 }
   0xa   :  { %56 = vmatpush.msra.mxu0 %v29_v8 }
   0xb   :  { %76 = vmatpush.msra.mxu1 %v45_v9 }
   0xc   :  { %57 = vmatpush.msra.mxu0 %v28_v10 }
   0xd   :  { %77 = vmatpush.msra.mxu1 %v44_v11 }
   0xe   :  { %9 = vsyncpa [#allocation4], 0  ;;  %v26_v14 = vld [vmem:[%s267_s1 + $0x40] sm:$0xff]  ;;  %58 = vmatpush.msra.mxu0 %v27_v12  ;;  %v25_v16 = vld [vmem:[%s267_s1 + $0x38] sm:$0xff]  ;;  %v51_v34 = vstv %s268_s2  ;;  %s101_s4 = sshll.u32 %s269_s3, 4  ;;  %vm92_vm0 = vcmask 64512   ;;  %s102_s4 = int_to_ptr.hbm [resolvable:$true] %s101_s4 }
   0xf   :  { %v42_v15 = vld [vmem:[%s267_s1 + $0xc0] sm:$0xff]  ;;  %78 = vmatpush.msra.mxu1 %v43_v13  ;;  %v41_v17 = vld [vmem:[%s267_s1 + $0xb8] sm:$0xff]  ;;  %v24_v18 = vld [vmem:[%s267_s1 + $0x30] sm:$0xff] }
  0x10   :  { %59 = vmatpush.msra.mxu0 %v26_v14  ;;  %v40_v19 = vld [vmem:[%s267_s1 + $0xb0] sm:$0xff]  ;;  %v23_v20 = vld [vmem:[%s267_s1 + $0x28] sm:$0xff]  ;;  %v22_v22 = vld [vmem:[%s267_s1 + $0x20] sm:$0xff] }
  0x11   :  { %79 = vmatpush.msra.mxu1 %v42_v15  ;;  %v39_v21 = vld [vmem:[%s267_s1 + $0xa8] sm:$0xff]  ;;  %v38_v23 = vld [vmem:[%s267_s1 + $0xa0] sm:$0xff]  ;;  %v21_v24 = vld [vmem:[%s267_s1 + $0x18] sm:$0xff] }
  0x12   :  { %60 = vmatpush.msra.mxu0 %v25_v16  ;;  %v37_v25 = vld [vmem:[%s267_s1 + $0x98] sm:$0xff]  ;;  %v20_v26 = vld [vmem:[%s267_s1 + $0x10] sm:$0xff]  ;;  %v19_v28 = vld [vmem:[%s267_s1 + $0x8] sm:$0xff] }
  0x13   :  { %80 = vmatpush.msra.mxu1 %v41_v17  ;;  %v36_v27 = vld [vmem:[%s267_s1 + $0x90] sm:$0xff]  ;;  %v35_v29 = vld [vmem:[%s267_s1 + $0x88] sm:$0xff]  ;;  %v18_v30 = vld [vmem:[%s267_s1] sm:$0xff] }
  0x14   :  { %61 = vmatpush.msra.mxu0 %v24_v18  ;;  %v34_v31 = vld [vmem:[%s267_s1 + $0x80] sm:$0xff]  ;;  %v17_v33 = vld [vmem:[%s266_s0 + $0x8] sm:$0xff]  ;;  %s137_s1 = smov [#allocation3]  }
  0x15   :  { %81 = vmatpush.msra.mxu1 %v40_v19  ;;  %v16_v32 = vld [vmem:[%s266_s0] sm:$0xff]  ;;  %s99_s28 = sshll.u32 %s137_s1, 4  ;;  %s100_s28 = int_to_ptr.vmem [resolvable:$true] %s99_s28 }
  0x16   :  { %62 = vmatpush.msra.mxu0 %v23_v20 }
  0x17   :  { %82 = vmatpush.msra.mxu1 %v39_v21 }
  0x18   :  { %63 = vmatpush.msra.mxu0 %v22_v22 }
  0x19   :  { %83 = vmatpush.msra.mxu1 %v38_v23 }
  0x1a   :  { %64 = vmatpush.msra.mxu0 %v21_v24 }
  0x1b   :  { %84 = vmatpush.msra.mxu1 %v37_v25 }
  0x1c   :  { %65 = vmatpush.msra.mxu0 %v20_v26 }
  0x1d   :  { %85 = vmatpush.msra.mxu1 %v36_v27 }
  0x1e   :  { %66 = vmatpush.msra.mxu0 %v19_v28 }
  0x1f   :  { %86 = vmatpush.msra.mxu1 %v35_v29 }
  0x20   :  { %67 = vmatpush.msra.mxu0 %v18_v30 }
  0x21   :  { %87 = vmatpush.msra.mxu1 %v34_v31  ;;  %68 = vmatmul.f32.vlgmr.msra.gmra.mxu0 %v16_v32 }
  0x22   :  { %88 = vmatmul.f32.vlgmr.msra.gmra.mxu1 %v17_v33 }
  0x9e   :  { %v69_v35 = vpop.f32.mrf.mxu0 }
  0x9f   :  { %v89_v36 = vpop.f32.mrf.mxu1  ;;  %v70_v37 = vadd.f32 %v69_v35, %v51_v34 }
  0xa1   :  { %v90_v38 = vadd.f32 %v89_v36, %v70_v37 }
  0xa3   :  { %93 = vst.msk [vmem:[#allocation3] sm:$0xff] %vm92_vm0, %v90_v38 }
  0xa4   :  { %104 = dma.vmem_to_hbm [thread:$0]  %s100_s28, 128, %s102_s4, [#allocation4]  }
  0xa5   :  { %135 = dma.done.wait [#allocation4], 128  }
  0xa6   :  { %136 = vsyncadd [#allocation4], 4294967168 }
  0xa7   :  { %109 = vsyncpa [#allocation4], 1 }

</bundles_post_ra>
